<compile_context>
chip_gen: v6e
topology: v6e:2x2x1
jax: 0.10.0
libtpu: 0.0.40
codegen_flags: <defaults>
</compile_context>

<pallas_src>
import jax
import jax.numpy as jnp
from jax import lax
from jax.experimental import pallas as pl
from jax.experimental.pallas import tpu as pltpu

EPS = 1e-5  # nn.InstanceNorm2d default eps (affine=False, no running stats)

# (input_dim, output_dim, stride) for the six BottleneckLayers.
BLOCK_CFG = [(32, 32, 1), (32, 32, 1),
             (32, 64, 2), (64, 64, 1),
             (64, 96, 2), (96, 96, 1)]


# ----------------------------------------------------------------------------
# Fused conv (+ InstanceNorm + ReLU + residual) Pallas kernel
# ----------------------------------------------------------------------------
def _make_fused_conv_kernel(do_norm, do_relu, with_residual):
    def kernel(p_ref, w_ref, b_ref, *rest):
        if with_residual:
            res_ref, o_ref = rest
        else:
            (o_ref,) = rest

        # (Cout, K) @ (K, HW) on the MXU with f32 accumulation, bias fused.
        y = jnp.dot(w_ref[...], p_ref[...],
                    preferred_element_type=jnp.float32) + b_ref[...]

        if do_norm:
            # InstanceNorm2d: per-channel normalization over spatial (lane) axis.
            mean = jnp.mean(y, axis=-1, keepdims=True)
            yc = y - mean
            var = jnp.mean(yc * yc, axis=-1, keepdims=True)
            y = yc * lax.rsqrt(var + EPS)            # rsqrt -> EUP, no divide

        if do_relu:
            y = jnp.maximum(y, 0.0)

        if with_residual:
            y = jnp.maximum(res_ref[...] + y, 0.0)   # relu(residual + y)

        o_ref[...] = y.astype(o_ref.dtype)

    return kernel


def fused_conv(patches, w2d, b, *, do_norm, do_relu, residual=None):
    """patches: (B, K, HW); w2d: (Cout, K); b: (Cout,);
    residual (optional): (B, Cout, HW).  Returns (B, Cout, HW) float32."""
    B, K, HW = patches.shape
    Cout = w2d.shape[0]
    b2 = b.reshape(Cout, 1)

    p_spec = pl.BlockSpec((pl.Squeezed(), K, HW), lambda n: (n, 0, 0))
    w_spec = pl.BlockSpec((Cout, K), lambda n: (0, 0))
    b_spec = pl.BlockSpec((Cout, 1), lambda n: (0, 0))
    o_spec = pl.BlockSpec((pl.Squeezed(), Cout, HW), lambda n: (n, 0, 0))

    in_specs = [p_spec, w_spec, b_spec]
    args = [patches, w2d, b2]
    if residual is not None:
        in_specs.append(pl.BlockSpec((pl.Squeezed(), Cout, HW),
                                     lambda n: (n, 0, 0)))
        args.append(residual)

    kernel = _make_fused_conv_kernel(do_norm, do_relu, residual is not None)

    return pl.pallas_call(
        kernel,
        out_shape=jax.ShapeDtypeStruct((B, Cout, HW), jnp.float32),
        grid_spec=pltpu.PrefetchScalarGridSpec(
            num_scalar_prefetch=0,
            grid=(B,),
            in_specs=in_specs,
            out_specs=o_spec,
        ),
        compiler_params=pltpu.CompilerParams(
            dimension_semantics=("parallel",)),
    )(*args)


# ----------------------------------------------------------------------------
# Wrapper helpers: im2col (layout transform only) + per-layer calls
# ----------------------------------------------------------------------------
def im2col(x, kh, kw, stride, pad):
    """x: (B, C, H, W) -> (B, C*kh*kw, Hout*Wout).  Feature order is channel-
    major then (dy, dx) row-major, matching w.reshape(Cout, Cin*kh*kw)."""
    B, C, H, W = x.shape
    Hout = (H + 2 * pad - kh) // stride + 1
    Wout = (W + 2 * pad - kw) // stride + 1
    if pad:
        x = jnp.pad(x, ((0, 0), (0, 0), (pad, pad), (pad, pad)))
    cols = []
    for dy in range(kh):
        for dx in range(kw):
            cols.append(x[:, :,
                          dy:dy + stride * Hout:stride,
                          dx:dx + stride * Wout:stride])
    patches = jnp.stack(cols, axis=2)            # (B, C, kh*kw, Hout, Wout)
    return patches.reshape(B, C * kh * kw, Hout * Wout), Hout, Wout


def conv_in_relu(x, w, b, *, stride, pad, do_norm, do_relu, residual=None):
    B, Cin, H, W = x.shape
    Cout, _, kh, kw = w.shape
    if kh == 1 and kw == 1 and stride == 1 and pad == 0:
        patches, Hout, Wout = x.reshape(B, Cin, H * W), H, W
    else:
        patches, Hout, Wout = im2col(x, kh, kw, stride, pad)
    res = None if residual is None else residual.reshape(B, Cout, Hout * Wout)
    y = fused_conv(patches, w.reshape(Cout, -1), b,
                   do_norm=do_norm, do_relu=do_relu, residual=res)
    return y.reshape(B, Cout, Hout, Wout)


def bottleneck(x, p, stride):
    # conv1 (1x1) + IN + relu
    y = conv_in_relu(x, p['w1'], p['b1'], stride=1, pad=0,
                     do_norm=True, do_relu=True)
    # conv2 (3x3, stride) + IN + relu
    y = conv_in_relu(y, p['w2'], p['b2'], stride=stride, pad=1,
                     do_norm=True, do_relu=True)
    # residual branch
    if stride != 1:
        res = conv_in_relu(x, p['w4'], p['b4'], stride=stride, pad=0,
                           do_norm=True, do_relu=False)
    else:
        res = x
    # conv3 (1x1) + IN + relu, then relu(res + .) -- all fused in one kernel
    y = conv_in_relu(y, p['w3'], p['b3'], stride=1, pad=0,
                     do_norm=True, do_relu=True, residual=res)
    return y


def feature_encoder(params, image1, image2):
    x = jnp.concatenate([image1, image2], axis=0)
    x = conv_in_relu(x, params['conv1_w'], params['conv1_b'],
                     stride=2, pad=3, do_norm=True, do_relu=True)
    for blk, (_, _, stride) in zip(params['blocks'], BLOCK_CFG):
        x = bottleneck(x, blk, stride)
    x = conv_in_relu(x, params['conv2_w'], params['conv2_b'],
                     stride=1, pad=0, do_norm=False, do_relu=False)
    n1 = image1.shape[0]
    return x[:n1], x[n1:]


# ----------------------------------------------------------------------------
# Pure-JAX reference (matches the PyTorch forward exactly)
# ----------------------------------------------------------------------------
def _conv_ref(x, w, b, stride, pad):
    y = lax.conv_general_dilated(
        x, w, (stride, stride), [(pad, pad), (pad, pad)],
        dimension_numbers=('NCHW', 'OIHW', 'NCHW'))
    return y + b[None, :, None, None]


def _inorm_ref(x):
    mean = jnp.mean(x, axis=(2, 3), keepdims=True)
    var = jnp.mean((x - mean) ** 2, axis=(2, 3), keepdims=True)
    return (x - mean) * lax.rsqrt(var + EPS)


def _relu(x):
    return jnp.maximum(x, 0.0)


def bottleneck_ref(x, p, stride):
    y = _relu(_inorm_ref(_conv_ref(x, p['w1'], p['b1'], 1, 0)))
    y = _relu(_inorm_ref(_conv_ref(y, p['w2'], p['b2'], stride, 1)))
    y = _relu(_inorm_ref(_conv_ref(y, p['w3'], p['b3'], 1, 0)))
    if stride != 1:
        z = _inorm_ref(_conv_ref(x, p['w4'], p['b4'], stride, 0))
        return _relu(z + y)
    return _relu(x + y)


def feature_encoder_ref(params, image1, image2):
    x = jnp.concatenate([image1, image2], axis=0)
    x = _relu(_inorm_ref(_conv_ref(x, params['conv1_w'], params['conv1_b'], 2, 3)))
    for blk, (_, _, stride) in zip(params['blocks'], BLOCK_CFG):
        x = bottleneck_ref(x, blk, stride)
    x = _conv_ref(x, params['conv2_w'], params['conv2_b'], 1, 0)
    n1 = image1.shape[0]
    return x[:n1], x[n1:]


# ----------------------------------------------------------------------------
# Deterministic parameter init (Conv2d-style uniform(-1/sqrt(fan_in), ...))
# ----------------------------------------------------------------------------
def _conv_init(key, cout, cin, kh, kw):
    kw_key, kb_key = jax.random.split(key)
    bound = 1.0 / float(cin * kh * kw) ** 0.5
    w = jax.random.uniform(kw_key, (cout, cin, kh, kw), jnp.float32, -bound, bound)
    b = jax.random.uniform(kb_key, (cout,), jnp.float32, -bound, bound)
    return w, b


def init_params(key, input_dim=3, output_dim=128):
    keys = jax.random.split(key, 2 + len(BLOCK_CFG))
    params = {}
    params['conv1_w'], params['conv1_b'] = _conv_init(keys[0], 32, input_dim, 7, 7)
    blocks = []
    for k, (cin, cout, stride) in zip(keys[1:-1], BLOCK_CFG):
        ks = jax.random.split(k, 4)
        cmid = cout // 4
        p = {}
        p['w1'], p['b1'] = _conv_init(ks[0], cmid, cin, 1, 1)
        p['w2'], p['b2'] = _conv_init(ks[1], cmid, cmid, 3, 3)
        p['w3'], p['b3'] = _conv_init(ks[2], cout, cmid, 1, 1)
        if stride != 1:
            p['w4'], p['b4'] = _conv_init(ks[3], cout, cin, 1, 1)
        blocks.append(p)
    params['blocks'] = blocks
    params['conv2_w'], params['conv2_b'] = _conv_init(keys[-1], output_dim, 96, 1, 1)
    return params


if __name__ == "__main__":
    N, C, H, W = 1, 3, 32, 32     # two images of (1, 3, 32, 32) -> batch 2 inside

    key = jax.random.PRNGKey(0)
    k1, k2, kp = jax.random.split(key, 3)
    image1 = jax.random.normal(k1, (N, C, H, W), dtype=jnp.float32)
    image2 = jax.random.normal(k2, (N, C, H, W), dtype=jnp.float32)
    params = init_params(kp, input_dim=C, output_dim=128)

    fmap1, fmap2 = feature_encoder(params, image1, image2)
    fmap1 = jax.block_until_ready(fmap1)
    fmap2 = jax.block_until_ready(fmap2)

    r1, r2 = feature_encoder_ref(params, image1, image2)
    r1 = jax.block_until_ready(r1)
    r2 = jax.block_until_ready(r2)

    assert fmap1.shape == (N, 128, H // 8, W // 8), fmap1.shape
    assert fmap2.shape == (N, 128, H // 8, W // 8), fmap2.shape
    assert jnp.allclose(fmap1, r1, rtol=1e-3, atol=1e-3), "fmap1 mismatch vs reference"
    assert jnp.allclose(fmap2, r2, rtol=1e-3, atol=1e-3), "fmap2 mismatch vs reference"

    print("KERNEL_OK")
</pallas_src>

<mosaic_0001>
module attributes {stable_mosaic.version = 11 : i64} {
  func.func @kernel(%arg0: i32, %arg1: memref<1x147x256xf32, #tpu.memory_space<vmem>>, %arg2: memref<32x147xf32, #tpu.memory_space<vmem>>, %arg3: memref<32x1xf32, #tpu.memory_space<vmem>>, %arg4: memref<1x32x256xf32, #tpu.memory_space<vmem>>) attributes {dimension_semantics = [#tpu.dimension_semantics<parallel>], iteration_bounds = array<i64: 2>, scalar_prefetch = 0 : i64, scratch_operands = 0 : i64, tpu.core_type = #tpu.core_type<tc>, window_params = [{transform_indices = @transform_0, window_bounds = array<i64: 1, 147, 256>}, {pipeline_mode = #tpu.pipeline_mode<synchronous>, transform_indices = @transform_1, window_bounds = array<i64: 32, 147>}, {pipeline_mode = #tpu.pipeline_mode<synchronous>, transform_indices = @transform_2, window_bounds = array<i64: 32, 1>}, {transform_indices = @transform_3, window_bounds = array<i64: 1, 32, 256>}]} {
    %c0 = arith.constant 0 : index
    %c0_0 = arith.constant 0 : index
    %0 = vector.load %arg2[%c0, %c0_0] : memref<32x147xf32, #tpu.memory_space<vmem>>, vector<32x147xf32>
    %c0_1 = arith.constant 0 : index
    %c0_2 = arith.constant 0 : index
    %c0_3 = arith.constant 0 : index
    %1 = vector.load %arg1[%c0_1, %c0_2, %c0_3] : memref<1x147x256xf32, #tpu.memory_space<vmem>>, vector<1x147x256xf32>
    %2 = vector.shape_cast %1 : vector<1x147x256xf32> to vector<147x256xf32>
    %cst = arith.constant dense<0.000000e+00> : vector<32x256xf32>
    %3 = tpu.matmul %0, %2, %cst {dimension_numbers = #tpu.dot_dimension_numbers<[1], [0], [0], [1], [0, 0, 1, 1], [], []>} : vector<32x147xf32>, vector<147x256xf32>, vector<32x256xf32> -> vector<32x256xf32>
    %c0_4 = arith.constant 0 : index
    %c0_5 = arith.constant 0 : index
    %4 = vector.load %arg3[%c0_4, %c0_5] : memref<32x1xf32, #tpu.memory_space<vmem>>, vector<32x1xf32>
    %5 = vector.broadcast %4 : vector<32x1xf32> to vector<32x256xf32>
    %6 = arith.addf %3, %5 : vector<32x256xf32>
    %cst_6 = arith.constant dense<0.000000e+00> : vector<32xf32>
    %7 = vector.multi_reduction <add>, %6, %cst_6 [1] : vector<32x256xf32> to vector<32xf32>
    %8 = vector.shape_cast %7 : vector<32xf32> to vector<32x1xf32>
    %cst_7 = arith.constant 2.560000e+02 : f32
    %9 = vector.broadcast %cst_7 : f32 to vector<32x1xf32>
    %10 = arith.divf %8, %9 : vector<32x1xf32>
    %11 = vector.broadcast %10 : vector<32x1xf32> to vector<32x256xf32>
    %12 = arith.subf %6, %11 : vector<32x256xf32>
    %13 = arith.mulf %12, %12 : vector<32x256xf32>
    %cst_8 = arith.constant dense<0.000000e+00> : vector<32xf32>
    %14 = vector.multi_reduction <add>, %13, %cst_8 [1] : vector<32x256xf32> to vector<32xf32>
    %15 = vector.shape_cast %14 : vector<32xf32> to vector<32x1xf32>
    %cst_9 = arith.constant 2.560000e+02 : f32
    %16 = vector.broadcast %cst_9 : f32 to vector<32x1xf32>
    %17 = arith.divf %15, %16 : vector<32x1xf32>
    %cst_10 = arith.constant 9.99999974E-6 : f32
    %18 = vector.broadcast %cst_10 : f32 to vector<32x1xf32>
    %19 = arith.addf %17, %18 : vector<32x1xf32>
    %20 = math.rsqrt %19 : vector<32x1xf32>
    %21 = vector.broadcast %20 : vector<32x1xf32> to vector<32x256xf32>
    %22 = arith.mulf %12, %21 : vector<32x256xf32>
    %cst_11 = arith.constant 0.000000e+00 : f32
    %23 = vector.broadcast %cst_11 : f32 to vector<32x256xf32>
    %24 = arith.maximumf %22, %23 : vector<32x256xf32>
    %c0_12 = arith.constant 0 : index
    %c0_13 = arith.constant 0 : index
    %c0_14 = arith.constant 0 : index
    %25 = vector.load %arg4[%c0_12, %c0_13, %c0_14] : memref<1x32x256xf32, #tpu.memory_space<vmem>>, vector<1x32x256xf32>
    %26 = vector.shape_cast %25 : vector<1x32x256xf32> to vector<32x256xf32>
    %27 = vector.shape_cast %24 : vector<32x256xf32> to vector<1x32x256xf32>
    tpu.vector_store %arg4[%c0_12, %c0_13, %c0_14], %27 {strides = array<i32>} : memref<1x32x256xf32, #tpu.memory_space<vmem>>, vector<1x32x256xf32>,
    return
  }
  func.func @transform_0(%arg0: i32) -> (i32, i32, i32) {
    %c0_i32 = arith.constant 0 : i32
    %c0_i32_0 = arith.constant 0 : i32
    %c0_i32_1 = arith.constant 0 : i32
    return %arg0, %c0_i32, %c0_i32_0 : i32, i32, i32
  }
  func.func @transform_1(%arg0: i32) -> (i32, i32) {
    %c0_i32 = arith.constant 0 : i32
    %c0_i32_0 = arith.constant 0 : i32
    %c0_i32_1 = arith.constant 0 : i32
    return %c0_i32, %c0_i32_0 : i32, i32
  }
  func.func @transform_2(%arg0: i32) -> (i32, i32) {
    %c0_i32 = arith.constant 0 : i32
    %c0_i32_0 = arith.constant 0 : i32
    %c0_i32_1 = arith.constant 0 : i32
    return %c0_i32, %c0_i32_0 : i32, i32
  }
  func.func @transform_3(%arg0: i32) -> (i32, i32, i32) {
    %c0_i32 = arith.constant 0 : i32
    %c0_i32_0 = arith.constant 0 : i32
    %c0_i32_1 = arith.constant 0 : i32
    return %arg0, %c0_i32, %c0_i32_0 : i32, i32, i32
  }
}

</mosaic_0001>

<bundles_post_ra>
// kernel: tpu_custom_call.1
= control target key start
LH: loop header
LB: loop body
LE: loop exit
PB: predicated region body
PF: predicated region fallthrough
CT: control target
= control target key end

     0   :  { %8 = vsyncpa [#allocation3], 0  ;;  %s886_s0 = inlined_call_operand.vmem [shape: f32[2,147,256], index: 0, kind: input, shape index: {}]   ;;  %s887_s1 = inlined_call_operand.vmem [shape: f32[32,147], index: 1, kind: input, shape index: {}]   ;;  %s888_s2 = inlined_call_operand.vmem [shape: f32[32,1], index: 2, kind: input, shape index: {}]   ;;  %s889_s3 = inlined_call_operand.hbm [shape: f32[2,32,256], index: 3, kind: output, shape index: {}]  }
   0x1   :  { %10 = vsyncpa [#allocation3 + $0x1], 0  ;;  %s700_s12 = smov 0   ;;  %s702_s13 = smov 0  }
   0x2   :  { %s704_s14 = smov 0   ;;  %s706_s15 = smov 0  }
   0x3 LB: > { %s721_s16 = sadd.s32 4294967295, %s674_s15   ;;  %s505_s17 = sadd.s32 4294967294, %s674_s15   ;;  %s674_s15 = sphi %s706_s15, %s895_s15   ;;  %s670_s14 = sphi %s704_s14, %s894_s14   ;;  %s666_s13 = sphi %s702_s13, %s893_s13   ;;  %s662_s12 = sphi %s700_s12, %s892_s12  }
   0x4   : > { %s725_s18 = sadd.s32 1, %s674_s15   ;;  %s91_s19 = sadd.s32 1, %s670_s14 }
   0x5   : > { %s88_s20 = ssub.s32 %s674_s15, %s725_s18  ;;  %p101_p0 = scmp.ne.s32.totalorder %s670_s14, %s666_s13 }
   0x6   : > { %p89_p1 = scmp.eq.s32.totalorder %s88_s20, 0  ;;  %p102_p2 = scmp.eq.s32.totalorder %s721_s16, 1 }
   0x7   : > { %p107_p3 = scmp.ne.s32.totalorder %s666_s13, %s662_s12  ;;  %p108_p4 = scmp.eq.s32.totalorder %s505_s17, 1 }
   0x8   : > { %s736_s21 = scalar_select %p89_p1, %s670_s14, %s91_s19  }
   0x9   : > { %p738_p5 = por %p102_p2, %p101_p0  ;;  %p742_p6 = por %p108_p4, %p107_p3 }
   0xa   : > { %p508_p7 = scmp.ge.s32.totalorder %s674_s15, 1  ;;  %p140_p8 = scmp.lt.s32.totalorder %s674_s15, 3 }
   0xc   : > { %p141_p9 = pnand %p508_p7, %p140_p8 }
   0xd   : > { %p164_p10 = scmp.lt.s32.totalorder (!%p141_p9), %s721_s16, 1  ;;  %s161_s8 = sand.u32 (!%p141_p9), 1, %s666_s13  }
   0xe   : > { %144 = sbr.rel (%p141_p9) target bundleno = 590 (0x24e), region = 32  ;;  %s509_s9 = sshll.u32 (!%p141_p9), %s161_s8, 6 }
   0xf   : > { %s163_s10 = scalar_lea.vmem (!%p141_p9), [#allocation2], %s509_s9  ;;  %s677_s26 = smov (!%p141_p9), [#allocation2]  }
  0x10   : > { %s443_s17 = sshll.u32 (!%p141_p9), %s163_s10, 4  ;;  %s618_s27 = sshll.u32 (!%p141_p9), %s677_s26, 4  ;;  %s842_s17 = int_to_ptr.vmem [resolvable:$true] %s443_s17  ;;  %s619_s27 = int_to_ptr.vmem [resolvable:$false] %s618_s27 }
  0x11   : > { %s614_s25 = scalar_lea.vmem (!%p141_p9), %s842_s17, 1024  ;;  %p621_p0 = scmp.lt.s32.totalorder (!%p141_p9), %s842_s17, %s619_s27 }
  0x12   : > { %p615_p11 = scmp.ne.s32.totalorder (!%p141_p9), %s842_s17, %s614_s25 }
  0x13   : > { %v170_v0 = vld [vmem:[%s887_s1 + $0x8] sm:$0xff]  ;;  %vm239_vm0 = vcmask 154624   ;;  %s165_s28 = scalar_select %p164_p10, %s721_s16, 1  ;;  %v676_v2 = vmov 0   ;;  %v215_v3 = vld [vmem:[%s888_s2] sm:$0xff]  ;;  %v217_v4 = vld [vmem:[%s888_s2 + $0x10] sm:$0xff] }
  0x14   : > { %v174_v1 = vld [vmem:[%s887_s1 + $0x28] sm:$0xff]  ;;  %513 = vmatprep.mubr.msk.f32.mxu0 %vm239_vm0, %v170_v0  ;;  %604 = vset.pattern.permute.xlu0 %v676_v2  ;;  %vm252_vm1 = vcmask 1042432   ;;  %v169_v44 = vld [vmem:[%s887_s1] sm:$0xff]  ;;  %v172_v46 = vld [vmem:[%s887_s1 + $0x18] sm:$0xff]  ;;  %p616_p12 = pnand %p615_p11, %p738_p5 }
  0x15   : > { %515 = vmatprep.mubr.msk.f32.mxu1 %vm239_vm0, %v174_v1  ;;  %605 = vset.pattern.permute.xlu1 %v676_v2  ;;  %s561_s6 = smul.u32 304, %s165_s28  ;;  %v216_v5 = vld [vmem:[%s888_s2 + $0x8] sm:$0xff]  ;;  %v173_v45 = vld [vmem:[%s887_s1 + $0x20] sm:$0xff]  ;;  %v176_v47 = vld [vmem:[%s887_s1 + $0x38] sm:$0xff]  ;;  %s620_s28 = scalar_lea.vmem %s619_s27, 2048 }
  0x16   : > { %221 = vperm.xlu0 %604, %v215_v3   ;;  %231 = vperm.xlu1 %605, %v217_v4   ;;  %v218_v48 = vld [vmem:[%s888_s2 + $0x18] sm:$0xff]  ;;  %v171_v49 = vld [vmem:[%s887_s1 + $0x10] sm:$0xff]  ;;  %p617_p13 = pneg %p616_p12  ;;  %p622_p1 = scmp.lt.s32.totalorder %s620_s28, %s614_s25 }
  0x17   : > { %s770_s11 = scalar_lea.vmem %s886_s0, %s561_s6  ;;  %v175_v50 = vld [vmem:[%s887_s1 + $0x30] sm:$0xff] }
  0x18   : > { %v208_v6 = vld [vmem:[%s770_s11 + $0xf8] sm:$0xff]  ;;  %v207_v7 = vld [vmem:[%s770_s11 + $0xf0] sm:$0xff]  ;;  %v206_v8 = vld [vmem:[%s770_s11 + $0xe8] sm:$0xff]  ;;  %p623_p2 = por %p622_p1, %p621_p0 }
  0x19   : > { %259 = vmatprep.subr.mxu0 %v208_v6  ;;  %523 = vmatprep.subr.mxu1 %v208_v6  ;;  %v205_v9 = vld [vmem:[%s770_s11 + $0xe0] sm:$0xff]  ;;  %v204_v10 = vld [vmem:[%s770_s11 + $0xd8] sm:$0xff]  ;;  %v203_v11 = vld [vmem:[%s770_s11 + $0xd0] sm:$0xff] }
  0x1a   : > { %226 = vperm.xlu0 %604, %v216_v5   ;;  %260 = vmatpush1.msra.mxu0 %v207_v7  ;;  %v202_v12 = vld [vmem:[%s770_s11 + $0xc8] sm:$0xff]  ;;  %v201_v13 = vld [vmem:[%s770_s11 + $0xc0] sm:$0xff]  ;;  %v200_v14 = vld [vmem:[%s770_s11 + $0xb8] sm:$0xff]  ;;  %p624_p3 = pnand %p623_p2, %p617_p13 }
  0x1b   : > { %542 = vmatpush1.msra.mxu1 %v207_v7  ;;  %261 = vmatprep.subr.mxu0 %v206_v8  ;;  %v199_v15 = vld [vmem:[%s770_s11 + $0xb0] sm:$0xff]  ;;  %v198_v16 = vld [vmem:[%s770_s11 + $0xa8] sm:$0xff]  ;;  %v197_v17 = vld [vmem:[%s770_s11 + $0xa0] sm:$0xff] }
  0x1c   : > { %524 = vmatprep.subr.mxu1 %v206_v8  ;;  %262 = vmatpush1.msra.mxu0 %v205_v9  ;;  %v196_v18 = vld [vmem:[%s770_s11 + $0x98] sm:$0xff]  ;;  %v195_v19 = vld [vmem:[%s770_s11 + $0x90] sm:$0xff]  ;;  %v194_v20 = vld [vmem:[%s770_s11 + $0x88] sm:$0xff] }
  0x1d   : > { %543 = vmatpush1.msra.mxu1 %v205_v9  ;;  %263 = vmatprep.subr.mxu0 %v204_v10  ;;  %v193_v21 = vld [vmem:[%s770_s11 + $0x80] sm:$0xff]  ;;  %v192_v22 = vld [vmem:[%s770_s11 + $0x78] sm:$0xff]  ;;  %v191_v23 = vld [vmem:[%s770_s11 + $0x70] sm:$0xff] }
  0x1e   : > { %525 = vmatprep.subr.mxu1 %v204_v10  ;;  %264 = vmatpush1.msra.mxu0 %v203_v11  ;;  %v190_v24 = vld [vmem:[%s770_s11 + $0x68] sm:$0xff]  ;;  %v189_v25 = vld [vmem:[%s770_s11 + $0x60] sm:$0xff]  ;;  %v188_v26 = vld [vmem:[%s770_s11 + $0x58] sm:$0xff] }
  0x1f   : > { %544 = vmatpush1.msra.mxu1 %v203_v11  ;;  %265 = vmatprep.subr.mxu0 %v202_v12  ;;  %v187_v27 = vld [vmem:[%s770_s11 + $0x50] sm:$0xff]  ;;  %v186_v28 = vld [vmem:[%s770_s11 + $0x48] sm:$0xff]  ;;  %v185_v29 = vld [vmem:[%s770_s11 + $0x40] sm:$0xff] }
  0x20   : > { %526 = vmatprep.subr.mxu1 %v202_v12  ;;  %266 = vmatpush1.msra.mxu0 %v201_v13  ;;  %v184_v30 = vld [vmem:[%s770_s11 + $0x38] sm:$0xff]  ;;  %v183_v31 = vld [vmem:[%s770_s11 + $0x30] sm:$0xff]  ;;  %v182_v32 = vld [vmem:[%s770_s11 + $0x28] sm:$0xff] }
  0x21   : > { %545 = vmatpush1.msra.mxu1 %v201_v13  ;;  %267 = vmatprep.subr.mxu0 %v200_v14  ;;  %v181_v33 = vld [vmem:[%s770_s11 + $0x20] sm:$0xff]  ;;  %v180_v34 = vld [vmem:[%s770_s11 + $0x18] sm:$0xff]  ;;  %v179_v35 = vld [vmem:[%s770_s11 + $0x10] sm:$0xff] }
  0x22   : > { %527 = vmatprep.subr.mxu1 %v200_v14  ;;  %268 = vmatpush1.msra.mxu0 %v199_v15  ;;  %v178_v36 = vld [vmem:[%s770_s11 + $0x8] sm:$0xff]  ;;  %v177_v37 = vld [vmem:[%s770_s11] sm:$0xff]  ;;  %v212_v40 = vld [vmem:[%s770_s11 + $0x118] sm:$0xff] }
  0x23   : > { %546 = vmatpush1.msra.mxu1 %v199_v15  ;;  %269 = vmatprep.subr.mxu0 %v198_v16  ;;  %v214_v38 = vld [vmem:[%s770_s11 + $0x128] sm:$0x7]  ;;  %v213_v39 = vld [vmem:[%s770_s11 + $0x120] sm:$0x7]  ;;  %v211_v41 = vld [vmem:[%s770_s11 + $0x110] sm:$0xff] }
  0x24   : > { %528 = vmatprep.subr.mxu1 %v198_v16  ;;  %270 = vmatpush1.msra.mxu0 %v197_v17  ;;  %v210_v42 = vld [vmem:[%s770_s11 + $0x108] sm:$0xff]  ;;  %v209_v43 = vld [vmem:[%s770_s11 + $0x100] sm:$0xff]  ;;  %s522_s11 = sshll.u32 %s721_s16, 10  ;;  %s846_s16 = scalar_lea.sflag [#allocation3], %s161_s8 }
  0x25   : > { %547 = vmatpush1.msra.mxu1 %v197_v17  ;;  %271 = vmatprep.subr.mxu0 %v196_v18  ;;  %s840_s24 = scalar_lea.hbm %s889_s3, %s522_s11 }
  0x26   : > { %529 = vmatprep.subr.mxu1 %v196_v18  ;;  %272 = vmatpush1.msra.mxu0 %v195_v19 }
  0x27   : > { %548 = vmatpush1.msra.mxu1 %v195_v19  ;;  %273 = vmatprep.subr.mxu0 %v194_v20 }
  0x28   : > { %530 = vmatprep.subr.mxu1 %v194_v20  ;;  %274 = vmatpush1.msra.mxu0 %v193_v21 }
  0x29   : > { %549 = vmatpush1.msra.mxu1 %v193_v21  ;;  %275 = vmatprep.subr.mxu0 %v192_v22 }
  0x2a   : > { %531 = vmatprep.subr.mxu1 %v192_v22  ;;  %276 = vmatpush1.msra.mxu0 %v191_v23 }
  0x2b   : > { %550 = vmatpush1.msra.mxu1 %v191_v23  ;;  %277 = vmatprep.subr.mxu0 %v190_v24 }
  0x2c   : > { %532 = vmatprep.subr.mxu1 %v190_v24  ;;  %278 = vmatpush1.msra.mxu0 %v189_v25 }
  0x2d   : > { %551 = vmatpush1.msra.mxu1 %v189_v25  ;;  %279 = vmatprep.subr.mxu0 %v188_v26 }
  0x2e   : > { %533 = vmatprep.subr.mxu1 %v188_v26  ;;  %280 = vmatpush1.msra.mxu0 %v187_v27 }
  0x2f   : > { %552 = vmatpush1.msra.mxu1 %v187_v27  ;;  %281 = vmatprep.subr.mxu0 %v186_v28 }
  0x30   : > { %534 = vmatprep.subr.mxu1 %v186_v28  ;;  %282 = vmatpush1.msra.mxu0 %v185_v29 }
  0x31   : > { %553 = vmatpush1.msra.mxu1 %v185_v29  ;;  %283 = vmatprep.subr.mxu0 %v184_v30 }
  0x32   : > { %535 = vmatprep.subr.mxu1 %v184_v30  ;;  %284 = vmatpush1.msra.mxu0 %v183_v31 }
  0x33   : > { %554 = vmatpush1.msra.mxu1 %v183_v31  ;;  %285 = vmatprep.subr.mxu0 %v182_v32 }
  0x34   : > { %536 = vmatprep.subr.mxu1 %v182_v32  ;;  %286 = vmatpush1.msra.mxu0 %v181_v33 }
  0x35   : > { %555 = vmatpush1.msra.mxu1 %v181_v33  ;;  %287 = vmatprep.subr.mxu0 %v180_v34 }
  0x36   : > { %537 = vmatprep.subr.mxu1 %v180_v34  ;;  %288 = vmatpush1.msra.mxu0 %v179_v35 }
  0x37   : > { %556 = vmatpush1.msra.mxu1 %v179_v35  ;;  %289 = vmatprep.subr.mxu0 %v178_v36 }
  0x38   : > { %538 = vmatprep.subr.mxu1 %v178_v36  ;;  %290 = vmatpush1.msra.mxu0 %v177_v37 }
  0x39   : > { %557 = vmatpush1.msra.mxu1 %v177_v37  ;;  %511 = vmatprep.subr.msk.mxu0 %vm252_vm1, %v214_v38 }
  0x3a   : > { %539 = vmatprep.subr.msk.mxu1 %vm252_vm1, %v214_v38  ;;  %512 = vmatpush2.msk.msra.mxu0 %vm252_vm1, %v213_v39 }
  0x3b   : > { %558 = vmatpush2.msk.msra.mxu1 %vm252_vm1, %v213_v39  ;;  %319 = vmatprep.subr.mxu0 %v212_v40 }
  0x3c   : > { %540 = vmatprep.subr.mxu1 %v212_v40  ;;  %320 = vmatpush2.msra.mxu0 %v211_v41 }
  0x3d   : > { %559 = vmatpush2.msra.mxu1 %v211_v41  ;;  %321 = vmatprep.subr.mxu0 %v210_v42 }
  0x3e   : > { %541 = vmatprep.subr.mxu1 %v210_v42  ;;  %322 = vmatpush2.msra.mxu0 %v209_v43 }
  0x3f   : > { %560 = vmatpush2.msra.mxu1 %v209_v43  ;;  %324 = vmatmul.mubr.f32.vlgmr.msra.gmra.mxu0 %v169_v44 }
  0x40   : > { %336 = vmatmul.mubr.f32.vlgmr.msra.gmra.mxu1 %v173_v45  ;;  %514 = vmatprep.mubr.msk.f32.mxu0 %vm239_vm0, %v172_v46 }
  0x41   : > { %516 = vmatprep.mubr.msk.f32.mxu1 %vm239_vm0, %v176_v47  ;;  %236 = vperm.xlu1 %605, %v218_v48  }
  0x43   : > { %330 = vmatmul.mubr.f32.gmra.mxu0 %v171_v49 }
  0x44   : > { %342 = vmatmul.mubr.f32.gmra.mxu1 %v175_v50 }
  0x91   : > { %v222_v51 = vpop.permute.xlu0 %221  ;;  %v232_v52 = vpop.permute.xlu1 %231 }
  0x95   : > { %v227_v62 = vpop.permute.xlu0 %226 }
  0xbc   : > { %v237_v0 = vpop.permute.xlu1 %236 }
  0xff   : > { %v325_v53 = vpop.f32.mrf.mxu0 }
 0x100   : > { %v337_v54 = vpop.f32.mrf.mxu1  ;;  %v326_v57 = vadd.f32 %v325_v53, %v222_v51 }
 0x101   : > { %v327_v55 = vpop.f32.mrf.mxu0  ;;  %v338_v61 = vadd.f32 %v337_v54, %v232_v52 }
 0x102   : > { %v339_v56 = vpop.f32.mrf.mxu1  ;;  %v328_v58 = vadd.f32 %v327_v55, %v222_v51 }
 0x103   : > { %v331_v59 = vpop.f32.mrf.mxu0  ;;  %v340_v63 = vadd.f32 %v339_v56, %v232_v52 }
 0x104   : > { %v343_v60 = vpop.f32.mrf.mxu1  ;;  %v348_v1 = vadd.f32 %v328_v58, %v326_v57  ;;  %v332_v4 = vadd.f32 %v331_v59, %v227_v62 }
 0x105   : > { %v333_v2 = vpop.f32.mrf.mxu0  ;;  %v344_v6 = vadd.f32 %v343_v60, %v237_v0  ;;  %v354_v9 = vadd.f32 %v340_v63, %v338_v61 }
 0x106   : > { %v345_v3 = vpop.f32.mrf.mxu1  ;;  %v334_v5 = vadd.f32 %v333_v2, %v227_v62  ;;  %349 = vadd.xlane.f32.xlu0 %v348_v1 }
 0x107   : > { %v346_v7 = vadd.f32 %v345_v3, %v237_v0 }
 0x108   : > { %v351_v8 = vadd.f32 %v334_v5, %v332_v4 }
 0x109   : > { %v357_v10 = vadd.f32 %v346_v7, %v344_v6 }
 0x10a   : > { %352 = vadd.xlane.f32.xlu1 %v351_v8  ;;  %355 = vadd.xlane.f32.xlu0 %v354_v9 }
 0x10e   : > { %358 = vadd.xlane.f32.xlu0 %v357_v10 }
 0x18f   : > { %v350_v11 = vpop.xlane.xlu0 %349 }
 0x190   : > { %v361_v12 = vmul.f32 0.00390625, %v350_v11 }
 0x192   : > { %v365_v13 = vsub.f32 %v326_v57, %v361_v12  ;;  %v366_v14 = vsub.f32 %v328_v58, %v361_v12 }
 0x193   : > { %v353_v15 = vpop.xlane.xlu1 %352  ;;  %v356_v16 = vpop.xlane.xlu0 %355 }
 0x194   : > { %v362_v17 = vmul.f32 0.00390625, %v353_v15  ;;  %v363_v18 = vmul.f32 0.00390625, %v356_v16  ;;  %v373_v19 = vmul.f32 %v365_v13, %v365_v13  ;;  %v374_v20 = vmul.f32 %v366_v14, %v366_v14 }
 0x196   : > { %v367_v21 = vsub.f32 %v332_v4, %v362_v17  ;;  %v368_v22 = vsub.f32 %v334_v5, %v362_v17  ;;  %v369_v23 = vsub.f32 %v338_v61, %v363_v18  ;;  %v370_v24 = vsub.f32 %v340_v63, %v363_v18 }
 0x197   : > { %v359_v25 = vpop.xlane.xlu0 %358  ;;  %v381_v26 = vadd.f32 %v374_v20, %v373_v19 }
 0x198   : > { %v364_v27 = vmul.f32 0.00390625, %v359_v25  ;;  %v375_v28 = vmul.f32 %v367_v21, %v367_v21  ;;  %v376_v29 = vmul.f32 %v368_v22, %v368_v22  ;;  %v377_v30 = vmul.f32 %v369_v23, %v369_v23 }
 0x199   : > { %382 = vadd.xlane.f32.xlu1 %v381_v26  ;;  %v378_v31 = vmul.f32 %v370_v24, %v370_v24 }
 0x19a   : > { %v371_v32 = vsub.f32 %v344_v6, %v364_v27  ;;  %v372_v33 = vsub.f32 %v346_v7, %v364_v27  ;;  %v384_v34 = vadd.f32 %v376_v29, %v375_v28 }
 0x19b   : > { %v387_v35 = vadd.f32 %v378_v31, %v377_v30 }
 0x19c   : > { %385 = vadd.xlane.f32.xlu0 %v384_v34  ;;  %v379_v36 = vmul.f32 %v371_v32, %v371_v32  ;;  %v380_v37 = vmul.f32 %v372_v33, %v372_v33 }
 0x19d   : > { %388 = vadd.xlane.f32.xlu1 %v387_v35 }
 0x19e   : > { %v390_v38 = vadd.f32 %v380_v37, %v379_v36 }
 0x1a0   : > { %391 = vadd.xlane.f32.xlu0 %v390_v38 }
 0x222   : > { %v383_v39 = vpop.xlane.xlu1 %382 }
 0x223   : > { %v393_v40 = vmul.f32 0.00390625, %v383_v39 }
 0x225   : > { %v397_v41 = vadd.f32 1e-05, %v393_v40  ;;  %v386_v42 = vpop.xlane.xlu0 %385 }
 0x226   : > { %v389_v43 = vpop.xlane.xlu1 %388  ;;  %v394_v44 = vmul.f32 0.00390625, %v386_v42 }
 0x227   : > { %606 = vrsqrt.f32 %v397_v41  ;;  %v395_v45 = vmul.f32 0.00390625, %v389_v43 }
 0x228   : > { %v398_v46 = vadd.f32 1e-05, %v394_v44 }
 0x229   : > { %v399_v47 = vadd.f32 1e-05, %v395_v45  ;;  %v392_v48 = vpop.xlane.xlu0 %391 }
 0x22a   : > { %608 = vrsqrt.f32 %v398_v46  ;;  %v396_v49 = vmul.f32 0.00390625, %v392_v48 }
 0x22b   : > { %610 = vrsqrt.f32 %v399_v47 }
 0x22c   : > { %v400_v50 = vadd.f32 1e-05, %v396_v49 }
 0x22e   : > { %612 = vrsqrt.f32 %v400_v50 }
 0x234   : > { %v607_v51 = vpop.eup %606 }
 0x235   : > { %v405_v52 = vmul.f32 %v607_v51, %v365_v13  ;;  %v406_v53 = vmul.f32 %v607_v51, %v366_v14 }
 0x237   : > { %v609_v54 = vpop.eup %608  ;;  %v413_v55 = vmax.f32 %v405_v52, 0.0  ;;  %v414_v56 = vmax.f32 %v406_v53, 0.0 }
 0x238   : > { %v611_v57 = vpop.eup %610  ;;  %v407_v58 = vmul.f32 %v609_v54, %v367_v21  ;;  %v408_v59 = vmul.f32 %v609_v54, %v368_v22 }
 0x239   : > { %421 = vst [vmem:[%s163_s10] sm:$0xff] %v413_v55  ;;  %422 = vst [vmem:[%s163_s10 + $0x8] sm:$0xff] %v414_v56  ;;  %v409_v60 = vmul.f32 %v611_v57, %v369_v23  ;;  %v410_v61 = vmul.f32 %v611_v57, %v370_v24 }
 0x23a   : > { %v415_v62 = vmax.f32 %v407_v58, 0.0  ;;  %v416_v63 = vmax.f32 %v408_v59, 0.0 }
 0x23b   : > { %v613_v0 = vpop.eup %612  ;;  %v417_v1 = vmax.f32 %v409_v60, 0.0  ;;  %v418_v2 = vmax.f32 %v410_v61, 0.0 }
 0x23c   : > { %423 = vst [vmem:[%s163_s10 + $0x10] sm:$0xff] %v415_v62  ;;  %424 = vst [vmem:[%s163_s10 + $0x18] sm:$0xff] %v416_v63  ;;  %v411_v3 = vmul.f32 %v613_v0, %v371_v32  ;;  %v412_v4 = vmul.f32 %v613_v0, %v372_v33 }
 0x23d   : > { %425 = vst [vmem:[%s163_s10 + $0x20] sm:$0xff] %v417_v1  ;;  %426 = vst [vmem:[%s163_s10 + $0x28] sm:$0xff] %v418_v2 }
 0x23e   : > { %v419_v5 = vmax.f32 %v411_v3, 0.0  ;;  %v420_v6 = vmax.f32 %v412_v4, 0.0 }
 0x240   : > { %427 = vst [vmem:[%s163_s10 + $0x30] sm:$0xff] %v419_v5  ;;  %428 = vst [vmem:[%s163_s10 + $0x38] sm:$0xff] %v420_v6 }
 0x241   : > { %627 = shalt.err (!%p624_p3)
}
 0x242   : > { %s628_s29 = scalar_lea.hbm %s840_s24, 1024  ;;  %s632_s5 = scalar_lea.hbm %s889_s3, 2048 }
 0x243   : > { %p629_p4 = scmp.ne.s32.totalorder %s840_s24, %s628_s29  ;;  %p633_p9 = scmp.lt.s32.totalorder %s840_s24, %s889_s3 }
 0x244   : > { %p634_p10 = scmp.lt.s32.totalorder %s632_s5, %s628_s29 }
 0x245   : > { %p630_p7 = pnand %p629_p4, %p738_p5 }
 0x246   : > { %p635_p11 = por %p634_p10, %p633_p9 }
 0x247   : > { %p631_p8 = pneg %p630_p7 }
 0x249   : > { %p636_p12 = pnand %p635_p11, %p631_p8 }
 0x24b   : > { %639 = shalt.err (!%p636_p12)
}
 0x24c   : > { %s678_s8 = smov 256   ;;  %s679_s9 = smov 16  }
 0x24d   : > { %562 = dma.vmem_to_hbm [thread:$0]  (%p738_p5), %s842_s17, 1024, %s840_s24, %s846_s16, %s678_s8, %s678_s8, %s679_s9  }
 0x24e PF: > { %p568_p13 = scmp.ge.s32.totalorder %s674_s15, 2  ;;  %s458_s10 = sand.u32 1, %s662_s12  }
 0x24f   : > { %s459_s11 = scalar_lea.sflag [#allocation3], %s458_s10 }
 0x250   : > { %p565_p0 = pnand %p568_p13, %p742_p6 }
 0x252   : > { %p566_p1 = pneg %p565_p0 }
 0x254   : > { %657 = dma.done.wait (%p566_p1), %s459_s11, 1024  }
 0x255   : > { %659 = vsyncadd (%p566_p1), %s459_s11, 4294966272  ;;  %p13_p2 = scmp.ge.s32.totalorder %s725_s18, 4   ;;  %s892_s12 = smov %s666_s13 }
 0x256   : > { %s893_s13 = smov %s670_s14  ;;  %s894_s14 = smov %s736_s21 }
 0x257   : > { %s895_s15 = smov %s725_s18  ;;  %15 = sbr.rel (!%p13_p2) target bundleno = 3 (0x3), region = 67 }
 0x25c   :  { %464 = vsyncpa [#allocation3], 1 }
 0x25d   :  { %466 = vsyncpa [#allocation3 + $0x1], 1 }

</bundles_post_ra>
